<compile_context>
chip_gen: v6e
topology: v6e:2x2x1
jax: 0.10.0
libtpu: 0.0.40
codegen_flags: <defaults>
</compile_context>

<pallas_src>
import jax
import jax.numpy as jnp
from jax.experimental import pallas as pl
from jax.experimental.pallas import tpu as pltpu

_LANES = 128        # vreg lane width
_SUBLANES = 8       # vreg sublane count (f32)
_MAX_TILE_ROWS = 2048   # (2048, 128) f32 tile = 1 MiB per buffer


def _noop_teacher_kernel(x_ref, o_ref):
    # x_ref / o_ref: (tile_rows, 128) float32, lane-dense.
    half = x_ref[...] * 0.5
    # half - floor(half) is in [0, 1) for all finite inputs, so abs() is
    # redundant; NaN/inf propagate to NaN and fall through both compares -> 0.
    diff = half - jnp.floor(half)
    # even -> +1, odd -> -1, exactly 0.25 away (or NaN) -> 0.
    o_ref[...] = jnp.where(diff < 0.25, jnp.float32(1.0),
                           jnp.where(diff > 0.25, jnp.float32(-1.0),
                                     jnp.float32(0.0)))


def _noop_teacher_jax(x):
    """Fused pure-JAX path for small batches (dispatch-bound regime)."""
    xs = x[:, 0, 0, 0].astype(jnp.float32)
    half = xs * 0.5
    diff = half - jnp.floor(half)
    out = jnp.where(diff < 0.25, jnp.float32(1.0),
                    jnp.where(diff > 0.25, jnp.float32(-1.0),
                              jnp.float32(0.0)))
    return out[:, None]


def noop_teacher(x, *, min_pallas_batch=131072):
    """x: (B, C, H, W) array. Returns (B, 1) float32, same semantics as the
    PyTorch NoOpTeacher.forward.

    Batches below `min_pallas_batch` use a single fused pure-JAX path; larger
    batches go through the lane-dense Pallas kernel."""
    B = x.shape[0]

    if B < min_pallas_batch:
        return _noop_teacher_jax(x)

    # --- Pallas path ------------------------------------------------------
    # Strided gather of the single scalar per batch element stays in plain
    # JAX (pure layout glue; XLA's strided copy is the lower bound here).
    v = x[:, 0, 0, 0]  # (B,)

    # Lane-dense packing: pad B up to rows_pad * 128 and view as (rows, 128).
    rows_per_lane = -(-B // _LANES)                          # ceil(B / 128)
    rows_needed = -(-rows_per_lane // _SUBLANES) * _SUBLANES  # round up to 8

    if rows_needed >= 2 * _SUBLANES:
        # Aim for >= 2 tiles so v7x's two TensorCores can split the
        # "parallel" grid axis; cap the tile for VMEM / pipelining.
        half_rows = -(-(-(-rows_needed // 2)) // _SUBLANES) * _SUBLANES
        tile_rows = min(_MAX_TILE_ROWS, half_rows)
    else:
        tile_rows = rows_needed                              # single (8,128) tile
    n_tiles = -(-rows_needed // tile_rows)
    rows_pad = n_tiles * tile_rows

    # Fold pad / reshape / cast into one chained expression (single fusion).
    pad = rows_pad * _LANES - B
    if pad:
        v = jnp.pad(v, (0, pad))
    v2d = v.reshape(rows_pad, _LANES).astype(jnp.float32)

    out2d = pl.pallas_call(
        _noop_teacher_kernel,
        out_shape=jax.ShapeDtypeStruct((rows_pad, _LANES), jnp.float32),
        grid=(n_tiles,),
        in_specs=[pl.BlockSpec((tile_rows, _LANES), lambda i: (i, 0))],
        out_specs=pl.BlockSpec((tile_rows, _LANES), lambda i: (i, 0)),
        compiler_params=pltpu.CompilerParams(
            dimension_semantics=("parallel",)),
    )(v2d)

    # Back to the module's (B, 1) output layout (drops the padding lanes).
    return out2d.reshape(-1)[:B].reshape(B, 1)


def _reference(x):
    # Pure-JAX reference mirroring the PyTorch code exactly.
    xs = x[:, 0, 0, 0].astype(jnp.float32)
    frac = xs / 2.0
    flr = jnp.floor(xs / 2.0)
    even = (jnp.abs(frac - flr) < 0.25).astype(jnp.float32) * 1.0
    odd = (jnp.abs(frac - flr) > 0.25).astype(jnp.float32) * -1.0
    return jnp.expand_dims(even + odd, axis=-1)


if __name__ == "__main__":
    key = jax.random.PRNGKey(0)
    # NCHW input, small shapes (as in the module's usage).
    x = jax.random.normal(key, (2, 4, 16, 16), dtype=jnp.float32) * 3.0
    ref = _reference(x)

    # 1) Force the Pallas path even at this tiny batch so the kernel runs.
    out = jax.block_until_ready(noop_teacher(x, min_pallas_batch=0))
    assert out.shape == (2, 1), out.shape
    assert out.dtype == jnp.float32, out.dtype
    assert jnp.allclose(out, ref), (out, ref)

    # 2) Default path at small B (fused pure-JAX route) matches too.
    out_small = jax.block_until_ready(noop_teacher(x))
    assert jnp.allclose(out_small, ref)

    # 3) A modest larger batch exercising the multi-tile parallel grid.
    x2 = jax.random.normal(jax.random.PRNGKey(0), (4096, 2, 2, 2),
                           dtype=jnp.float32) * 5.0
    out2 = jax.block_until_ready(noop_teacher(x2, min_pallas_batch=0))
    ref2 = _reference(x2)
    assert out2.shape == (4096, 1)
    assert jnp.allclose(out2, ref2)

    print("KERNEL_OK")
</pallas_src>

<mosaic_0001>
module attributes {stable_mosaic.version = 11 : i64} {
  func.func @_noop_teacher_kernel(%arg0: i32, %arg1: memref<8x128xf32, #tpu.memory_space<vmem>>, %arg2: memref<8x128xf32, #tpu.memory_space<vmem>>) attributes {dimension_semantics = [#tpu.dimension_semantics<parallel>], iteration_bounds = array<i64: 1>, scalar_prefetch = 0 : i64, scratch_operands = 0 : i64, tpu.core_type = #tpu.core_type<tc>, window_params = [{transform_indices = @transform_0, window_bounds = array<i64: 8, 128>}, {transform_indices = @transform_1, window_bounds = array<i64: 8, 128>}]} {
    %c0 = arith.constant 0 : index
    %c0_0 = arith.constant 0 : index
    %0 = vector.load %arg1[%c0, %c0_0] : memref<8x128xf32, #tpu.memory_space<vmem>>, vector<8x128xf32>
    %cst = arith.constant 5.000000e-01 : f32
    %1 = vector.broadcast %cst : f32 to vector<8x128xf32>
    %2 = arith.mulf %0, %1 : vector<8x128xf32>
    %3 = math.floor %2 : vector<8x128xf32>
    %4 = arith.subf %2, %3 : vector<8x128xf32>
    %cst_1 = arith.constant 2.500000e-01 : f32
    %5 = vector.broadcast %cst_1 : f32 to vector<8x128xf32>
    %6 = arith.cmpf olt, %4, %5 : vector<8x128xf32>
    %cst_2 = arith.constant 2.500000e-01 : f32
    %7 = vector.broadcast %cst_2 : f32 to vector<8x128xf32>
    %8 = arith.cmpf ogt, %4, %7 : vector<8x128xf32>
    %cst_3 = arith.constant -1.000000e+00 : f32
    %cst_4 = arith.constant 0.000000e+00 : f32
    %9 = vector.broadcast %cst_3 : f32 to vector<8x128xf32>
    %10 = vector.broadcast %cst_4 : f32 to vector<8x128xf32>
    %11 = arith.select %8, %9, %10 : vector<8x128xi1>, vector<8x128xf32>
    %cst_5 = arith.constant 1.000000e+00 : f32
    %12 = vector.broadcast %cst_5 : f32 to vector<8x128xf32>
    %13 = arith.select %6, %12, %11 : vector<8x128xi1>, vector<8x128xf32>
    %c0_6 = arith.constant 0 : index
    %c0_7 = arith.constant 0 : index
    %14 = vector.load %arg2[%c0_6, %c0_7] : memref<8x128xf32, #tpu.memory_space<vmem>>, vector<8x128xf32>
    tpu.vector_store %arg2[%c0_6, %c0_7], %13 {strides = array<i32>} : memref<8x128xf32, #tpu.memory_space<vmem>>, vector<8x128xf32>,
    return
  }
  func.func @transform_0(%arg0: i32) -> (i32, i32) {
    %c0_i32 = arith.constant 0 : i32
    %c0_i32_0 = arith.constant 0 : i32
    return %arg0, %c0_i32 : i32, i32
  }
  func.func @transform_1(%arg0: i32) -> (i32, i32) {
    %c0_i32 = arith.constant 0 : i32
    %c0_i32_0 = arith.constant 0 : i32
    return %arg0, %c0_i32 : i32, i32
  }
}

</mosaic_0001>

<bundles_post_ra>
// kernel: tpu_custom_call.1
= control target key start
LH: loop header
LB: loop body
LE: loop exit
PB: predicated region body
PF: predicated region fallthrough
CT: control target
= control target key end

     0   :  { %6 = vsyncpa [#allocation3], 0  ;;  %s111_s0 = inlined_call_operand.hbm [shape: f32[8,128], index: 0, kind: input, shape index: {}]   ;;  %s112_s1 = inlined_call_operand.hbm [shape: f32[8,128], index: 1, kind: output, shape index: {}]  }
   0x1   :  { %7 = vsyncpa [#allocation4], 0  ;;  %s92_s6 = smov [#allocation2]  }
   0x2   :  { %s14_s7 = sshll.u32 %s92_s6, 4  ;;  %s15_s7 = int_to_ptr.vmem [resolvable:$true] %s14_s7 }
   0x3   :  { %s56_s8 = scalar_lea.vmem %s15_s7, 128  ;;  %p61_p1 = scmp.lt.s32.totalorder %s15_s7, %s15_s7 }
   0x4   :  { %p57_p0 = scmp.ne.s32.totalorder %s15_s7, %s56_s8  ;;  %p62_p2 = scmp.lt.s32.totalorder %s56_s8, %s56_s8 }
   0x6   :  { %p63_p3 = por %p62_p2, %p61_p1 }
   0x8   :  { %p64_p4 = pnand %p63_p3, %p57_p0 }
   0xa   :  { %67 = shalt.err (!%p64_p4)
}
   0xb   :  { %17 = dma.hbm_to_vmem [thread:$0]  %s111_s0, 128, %s15_s7, [#allocation3]  }
   0xc   :  { %88 = dma.done.wait [#allocation3], 128  }
   0xd   :  { %89 = vsyncadd [#allocation3], 4294967168  ;;  %v21_v0 = vld [vmem:[#allocation2] sm:$0xff]  ;;  %s93_s11 = smov [#allocation5]   ;;  %v94_v4 = vmov 0.0  }
   0xe   :  { %v22_v1 = vmul.f32 0.5, %v21_v0  ;;  %s36_s12 = sshll.u32 %s93_s11, 4  ;;  %s37_s12 = int_to_ptr.vmem [resolvable:$true] %s36_s12 }
   0xf   :  { %s68_s13 = scalar_lea.vmem %s37_s12, 128  ;;  %p73_p6 = scmp.lt.s32.totalorder %s37_s12, %s37_s12 }
  0x10   :  { %v23_v2 = vfloor.f32 %v22_v1  ;;  %p69_p5 = scmp.ne.s32.totalorder %s37_s12, %s68_s13  ;;  %p74_p7 = scmp.lt.s32.totalorder %s68_s13, %s68_s13 }
  0x12   :  { %v24_v3 = vsub.f32 %v22_v1, %v23_v2  ;;  %p75_p8 = por %p74_p7, %p73_p6 }
  0x14   :  { %vm25_vm0 = vcmp.lt.f32.partialorder %v24_v3, 0.25  ;;  %vm26_vm1 = vcmp.gt.f32.partialorder %v24_v3, 0.25  ;;  %p76_p9 = pnand %p75_p8, %p69_p5 }
  0x15   :  { %v27_v5 = vsel %vm26_vm1, -1.0, %v94_v4 }
  0x16   :  { %v28_v6 = vsel %vm25_vm0, 1.0, %v27_v5 }
  0x17   :  { %29 = vst [vmem:[#allocation5] sm:$0xff] %v28_v6 }
  0x18   :  { %79 = shalt.err (!%p76_p9)
}
  0x19   :  { %39 = dma.vmem_to_hbm [thread:$0]  %s37_s12, 128, %s112_s1, [#allocation4]  }
  0x1a   :  { %90 = dma.done.wait [#allocation4], 128  }
  0x1b   :  { %91 = vsyncadd [#allocation4], 4294967168 }
  0x1c   :  { %43 = vsyncpa [#allocation3], 1 }
  0x1d   :  { %44 = vsyncpa [#allocation4], 1 }

</bundles_post_ra>
